<compile_context>
chip_gen: v5e
topology: v5e:2x2
jax: 0.10.0
libtpu: 0.0.40
codegen_flags: <defaults>
</compile_context>

<pallas_src>
import functools
import math

import jax
import jax.numpy as jnp
from jax.experimental import pallas as pl
from jax.experimental.pallas import tpu as pltpu

SEQ_LEN = 8
BATCH = 2
HIDDEN = 32
N_HEAD = 4     # d_k = 8


# =============================== Pallas kernel ===============================

def mha_kernel(q_ref, k_ref, v_ref, negk_ref, maskrow_ref, wqkv_ref, wo_ref,
               o_ref, *, n_head, batch, seq):
    """Fused multi-head dot-scaled attention.

    q_ref/k_ref/v_ref : (B*S, H) batch-major activations
    negk_ref          : (B, 1, S) additive key mask (0.0, or -1e30 on <PAD> keys)
    maskrow_ref       : (B*S, 1) query-row padding mask (1.0 on <PAD>, else 0.0)
    wqkv_ref          : (H, 3H) packed [Wq * 1/sqrt(d_k) | Wk | Wv]  (x @ W form)
    wo_ref            : (H, H)  output projection (x @ W form)
    """
    H = q_ref.shape[-1]
    dk = H // n_head

    wqkv = wqkv_ref[...]
    # Wide projections: one (B*S,H)@(H,H) matmul per Q/K/V, all heads at once
    # (instead of n_head tiny (.,8) matmuls).  Scale already folded into Wq.
    Q = jnp.dot(q_ref[...], wqkv[:, 0:H], preferred_element_type=jnp.float32)
    K = jnp.dot(k_ref[...], wqkv[:, H:2 * H], preferred_element_type=jnp.float32)
    V = jnp.dot(v_ref[...], wqkv[:, 2 * H:3 * H], preferred_element_type=jnp.float32)

    negk = negk_ref[...]                                    # (B, 1, S)

    ctx_heads = []
    for h in range(n_head):                                 # static unroll, n_head=4
        qh = Q[:, h * dk:(h + 1) * dk].reshape(batch, seq, dk)
        kh = K[:, h * dk:(h + 1) * dk].reshape(batch, seq, dk)
        vh = V[:, h * dk:(h + 1) * dk].reshape(batch, seq, dk)
        # scores batched over the batch axis: (B, S, S)
        s = jnp.einsum('bqd,bkd->bqk', qh, kh,
                       preferred_element_type=jnp.float32)
        s = s + negk                                        # mask <PAD> keys
        m = jnp.max(s, axis=-1, keepdims=True)
        e = jnp.exp(s - m)
        p = e * pl.reciprocal(jnp.sum(e, axis=-1, keepdims=True), approx=True)
        o = jnp.einsum('bqk,bkd->bqd', p, vh,
                       preferred_element_type=jnp.float32)  # (B, S, dk)
        ctx_heads.append(o.reshape(batch * seq, dk))

    ctx = jnp.concatenate(ctx_heads, axis=-1)               # (B*S, H), head-major lanes
    attn = jnp.dot(ctx, wo_ref[...], preferred_element_type=jnp.float32)
    # attention[padding_mask, :] = 0.  O_linear has no bias, so zeroing after the
    # output projection is equivalent to the reference's zeroing before it.
    o_ref[...] = jnp.where(maskrow_ref[...] > 0.5, 0.0, attn)


# =============================== JAX wrapper =================================

def _vmem_spec():
    return pl.BlockSpec(memory_space=pltpu.MemorySpace.VMEM)


def multi_head_attention(value, key, query, padding_mask, params, *, n_head=N_HEAD):
    """value/key/query: (S, B, H) f32; padding_mask: (S, B) bool -> (S, B, H)."""
    S, B, H = query.shape
    dk = H // n_head
    scale = 1.0 / math.sqrt(dk)

    def to_rows(x):                                         # (S,B,H) -> (B*S,H)
        return jnp.transpose(x, (1, 0, 2)).reshape(B * S, H)

    qf, kf, vf = to_rows(query), to_rows(key), to_rows(value)

    mask_bs = jnp.transpose(padding_mask, (1, 0))           # (B, S)
    # finite -1e30 (not -inf) so max-subtraction in-kernel never produces NaN
    negk = jnp.where(mask_bs, -1e30, 0.0).astype(jnp.float32)[:, None, :]  # (B,1,S)
    maskrow = mask_bs.astype(jnp.float32).reshape(B * S, 1)

    # Pack Q/K/V projection weights into one slab (one DMA instead of three)
    # and fold the 1/sqrt(d_k) scale into the Q columns.
    wqkv = jnp.concatenate(
        [params["wq"] * scale, params["wk"], params["wv"]], axis=1)  # (H, 3H)

    out_rows = pl.pallas_call(
        functools.partial(mha_kernel, n_head=n_head, batch=B, seq=S),
        out_shape=jax.ShapeDtypeStruct((B * S, H), jnp.float32),
        in_specs=[_vmem_spec() for _ in range(7)],
        out_specs=_vmem_spec(),
    )(qf, kf, vf, negk, maskrow, wqkv, params["wo"])

    return jnp.transpose(out_rows.reshape(B, S, H), (1, 0, 2))      # (S, B, H)


# ============================ pure-JAX reference =============================

def mha_reference(value, key, query, padding_mask, params, *, n_head=N_HEAD):
    S, B, H = query.shape
    dk = H // n_head
    q = (query @ params["wq"]).reshape(S, B, n_head, dk)
    k = (key @ params["wk"]).reshape(S, B, n_head, dk)
    v = (value @ params["wv"]).reshape(S, B, n_head, dk)
    scores = jnp.einsum('qbhd,kbhd->bhqk', q, k) / math.sqrt(dk)
    key_pad = jnp.transpose(padding_mask, (1, 0))[:, None, None, :]  # (B,1,1,S)
    scores = jnp.where(key_pad, -jnp.inf, scores)
    p = jax.nn.softmax(scores, axis=-1)
    ctx = jnp.einsum('bhqk,kbhd->qbhd', p, v).reshape(S, B, H)
    ctx = jnp.where(padding_mask[..., None], 0.0, ctx)
    return ctx @ params["wo"]


# ==================================== main ====================================

if __name__ == "__main__":
    root = jax.random.PRNGKey(0)
    kq, kk, kv, kw = jax.random.split(root, 4)

    S, B, H = SEQ_LEN, BATCH, HIDDEN

    # padding: batch element 1 has its last two positions as <PAD>
    padding_mask = jnp.zeros((S, B), dtype=bool).at[6:, 1].set(True)

    def make_input(k):
        x = jax.random.normal(k, (S, B, H), jnp.float32)
        return jnp.where(padding_mask[..., None], 0.0, x)   # <PAD> rows are zero

    query = make_input(kq)
    key_t = make_input(kk)
    value = make_input(kv)

    wkeys = jax.random.split(kw, 4)
    bound = 1.0 / math.sqrt(H)                               # nn.Linear default init

    def linear_weight(k):                                    # stored in x @ W form
        return jax.random.uniform(k, (H, H), jnp.float32, -bound, bound)

    params = dict(wq=linear_weight(wkeys[0]), wk=linear_weight(wkeys[1]),
                  wv=linear_weight(wkeys[2]), wo=linear_weight(wkeys[3]))

    fwd = jax.jit(functools.partial(multi_head_attention, n_head=N_HEAD))
    out = fwd(value, key_t, query, padding_mask, params)
    jax.block_until_ready(out)

    ref = mha_reference(value, key_t, query, padding_mask, params)
    assert out.shape == (S, B, H)
    assert jnp.all(jnp.isfinite(out))
    max_err = float(jnp.max(jnp.abs(out - ref)))
    assert max_err < 2e-2, f"mismatch vs reference: {max_err}"
    print("KERNEL_OK")
</pallas_src>

<mosaic_0001>
module attributes {stable_mosaic.version = 11 : i64} {
  func.func @mha_kernel(%arg0: memref<16x32xf32, #tpu.memory_space<vmem>>, %arg1: memref<16x32xf32, #tpu.memory_space<vmem>>, %arg2: memref<16x32xf32, #tpu.memory_space<vmem>>, %arg3: memref<2x1x8xf32, #tpu.memory_space<vmem>>, %arg4: memref<16x1xf32, #tpu.memory_space<vmem>>, %arg5: memref<32x96xf32, #tpu.memory_space<vmem>>, %arg6: memref<32x32xf32, #tpu.memory_space<vmem>>, %arg7: memref<16x32xf32, #tpu.memory_space<vmem>>) attributes {dimension_semantics = [], scalar_prefetch = 0 : i64, scratch_operands = 0 : i64, tpu.core_type = #tpu.core_type<tc>} {
    %c0 = arith.constant 0 : index
    %c0_0 = arith.constant 0 : index
    %0 = vector.load %arg5[%c0, %c0_0] : memref<32x96xf32, #tpu.memory_space<vmem>>, vector<32x96xf32>
    %c0_1 = arith.constant 0 : index
    %c0_2 = arith.constant 0 : index
    %1 = vector.load %arg0[%c0_1, %c0_2] : memref<16x32xf32, #tpu.memory_space<vmem>>, vector<16x32xf32>
    %2 = vector.extract_strided_slice %0 {offsets = [0, 0], sizes = [32, 32], strides = [1, 1]} : vector<32x96xf32> to vector<32x32xf32>
    %cst = arith.constant dense<0.000000e+00> : vector<16x32xf32>
    %3 = tpu.matmul %1, %2, %cst {dimension_numbers = #tpu.dot_dimension_numbers<[1], [0], [0], [1], [0, 0, 1, 1], [], []>} : vector<16x32xf32>, vector<32x32xf32>, vector<16x32xf32> -> vector<16x32xf32>
    %c0_3 = arith.constant 0 : index
    %c0_4 = arith.constant 0 : index
    %4 = vector.load %arg1[%c0_3, %c0_4] : memref<16x32xf32, #tpu.memory_space<vmem>>, vector<16x32xf32>
    %5 = vector.extract_strided_slice %0 {offsets = [0, 32], sizes = [32, 32], strides = [1, 1]} : vector<32x96xf32> to vector<32x32xf32>
    %cst_5 = arith.constant dense<0.000000e+00> : vector<16x32xf32>
    %6 = tpu.matmul %4, %5, %cst_5 {dimension_numbers = #tpu.dot_dimension_numbers<[1], [0], [0], [1], [0, 0, 1, 1], [], []>} : vector<16x32xf32>, vector<32x32xf32>, vector<16x32xf32> -> vector<16x32xf32>
    %c0_6 = arith.constant 0 : index
    %c0_7 = arith.constant 0 : index
    %7 = vector.load %arg2[%c0_6, %c0_7] : memref<16x32xf32, #tpu.memory_space<vmem>>, vector<16x32xf32>
    %8 = vector.extract_strided_slice %0 {offsets = [0, 64], sizes = [32, 32], strides = [1, 1]} : vector<32x96xf32> to vector<32x32xf32>
    %cst_8 = arith.constant dense<0.000000e+00> : vector<16x32xf32>
    %9 = tpu.matmul %7, %8, %cst_8 {dimension_numbers = #tpu.dot_dimension_numbers<[1], [0], [0], [1], [0, 0, 1, 1], [], []>} : vector<16x32xf32>, vector<32x32xf32>, vector<16x32xf32> -> vector<16x32xf32>
    %c0_9 = arith.constant 0 : index
    %c0_10 = arith.constant 0 : index
    %c0_11 = arith.constant 0 : index
    %10 = vector.load %arg3[%c0_9, %c0_10, %c0_11] : memref<2x1x8xf32, #tpu.memory_space<vmem>>, vector<2x1x8xf32>
    %11 = vector.extract_strided_slice %3 {offsets = [0, 0], sizes = [16, 8], strides = [1, 1]} : vector<16x32xf32> to vector<16x8xf32>
    %12 = vector.shape_cast %11 : vector<16x8xf32> to vector<2x8x8xf32>
    %13 = vector.extract_strided_slice %6 {offsets = [0, 0], sizes = [16, 8], strides = [1, 1]} : vector<16x32xf32> to vector<16x8xf32>
    %14 = vector.shape_cast %13 : vector<16x8xf32> to vector<2x8x8xf32>
    %15 = vector.extract_strided_slice %9 {offsets = [0, 0], sizes = [16, 8], strides = [1, 1]} : vector<16x32xf32> to vector<16x8xf32>
    %16 = vector.shape_cast %15 : vector<16x8xf32> to vector<2x8x8xf32>
    "tpu.trace_start"() <{level = 10 : i32, message = "bqd,bkd->bqk"}> : () -> ()
    %cst_12 = arith.constant dense<0.000000e+00> : vector<2x8x8xf32>
    %17 = tpu.matmul %12, %14, %cst_12 {dimension_numbers = #tpu.dot_dimension_numbers<[2], [2], [1], [1], [0, 0, 0, 1, 1, 1], [0], [0]>} : vector<2x8x8xf32>, vector<2x8x8xf32>, vector<2x8x8xf32> -> vector<2x8x8xf32>
    "tpu.trace_stop"() : () -> ()
    %18 = vector.broadcast %10 : vector<2x1x8xf32> to vector<2x8x8xf32>
    %19 = arith.addf %17, %18 : vector<2x8x8xf32>
    %cst_13 = arith.constant dense<0xFF800000> : vector<2x8xf32>
    %20 = vector.multi_reduction <maximumf>, %19, %cst_13 [2] : vector<2x8x8xf32> to vector<2x8xf32>
    %21 = vector.shape_cast %20 : vector<2x8xf32> to vector<2x8x1xf32>
    %22 = vector.broadcast %21 : vector<2x8x1xf32> to vector<2x8x8xf32>
    %23 = arith.subf %19, %22 : vector<2x8x8xf32>
    %24 = math.exp %23 : vector<2x8x8xf32>
    %cst_14 = arith.constant dense<0.000000e+00> : vector<2x8xf32>
    %25 = vector.multi_reduction <add>, %24, %cst_14 [2] : vector<2x8x8xf32> to vector<2x8xf32>
    %26 = vector.shape_cast %25 : vector<2x8xf32> to vector<2x8x1xf32>
    %27 = tpu.reciprocal %26 {approx = true} : vector<2x8x1xf32> -> vector<2x8x1xf32>
    %28 = vector.broadcast %27 : vector<2x8x1xf32> to vector<2x8x8xf32>
    %29 = arith.mulf %24, %28 : vector<2x8x8xf32>
    "tpu.trace_start"() <{level = 10 : i32, message = "bqk,bkd->bqd"}> : () -> ()
    %cst_15 = arith.constant dense<0.000000e+00> : vector<2x8x8xf32>
    %30 = tpu.matmul %29, %16, %cst_15 {dimension_numbers = #tpu.dot_dimension_numbers<[2], [1], [1], [2], [0, 0, 0, 1, 1, 2], [0], [0]>} : vector<2x8x8xf32>, vector<2x8x8xf32>, vector<2x8x8xf32> -> vector<2x8x8xf32>
    "tpu.trace_stop"() : () -> ()
    %31 = vector.shape_cast %30 : vector<2x8x8xf32> to vector<16x8xf32>
    %32 = vector.extract_strided_slice %3 {offsets = [0, 8], sizes = [16, 8], strides = [1, 1]} : vector<16x32xf32> to vector<16x8xf32>
    %33 = vector.shape_cast %32 : vector<16x8xf32> to vector<2x8x8xf32>
    %34 = vector.extract_strided_slice %6 {offsets = [0, 8], sizes = [16, 8], strides = [1, 1]} : vector<16x32xf32> to vector<16x8xf32>
    %35 = vector.shape_cast %34 : vector<16x8xf32> to vector<2x8x8xf32>
    %36 = vector.extract_strided_slice %9 {offsets = [0, 8], sizes = [16, 8], strides = [1, 1]} : vector<16x32xf32> to vector<16x8xf32>
    %37 = vector.shape_cast %36 : vector<16x8xf32> to vector<2x8x8xf32>
    "tpu.trace_start"() <{level = 10 : i32, message = "bqd,bkd->bqk"}> : () -> ()
    %cst_16 = arith.constant dense<0.000000e+00> : vector<2x8x8xf32>
    %38 = tpu.matmul %33, %35, %cst_16 {dimension_numbers = #tpu.dot_dimension_numbers<[2], [2], [1], [1], [0, 0, 0, 1, 1, 1], [0], [0]>} : vector<2x8x8xf32>, vector<2x8x8xf32>, vector<2x8x8xf32> -> vector<2x8x8xf32>
    "tpu.trace_stop"() : () -> ()
    %39 = vector.broadcast %10 : vector<2x1x8xf32> to vector<2x8x8xf32>
    %40 = arith.addf %38, %39 : vector<2x8x8xf32>
    %cst_17 = arith.constant dense<0xFF800000> : vector<2x8xf32>
    %41 = vector.multi_reduction <maximumf>, %40, %cst_17 [2] : vector<2x8x8xf32> to vector<2x8xf32>
    %42 = vector.shape_cast %41 : vector<2x8xf32> to vector<2x8x1xf32>
    %43 = vector.broadcast %42 : vector<2x8x1xf32> to vector<2x8x8xf32>
    %44 = arith.subf %40, %43 : vector<2x8x8xf32>
    %45 = math.exp %44 : vector<2x8x8xf32>
    %cst_18 = arith.constant dense<0.000000e+00> : vector<2x8xf32>
    %46 = vector.multi_reduction <add>, %45, %cst_18 [2] : vector<2x8x8xf32> to vector<2x8xf32>
    %47 = vector.shape_cast %46 : vector<2x8xf32> to vector<2x8x1xf32>
    %48 = tpu.reciprocal %47 {approx = true} : vector<2x8x1xf32> -> vector<2x8x1xf32>
    %49 = vector.broadcast %48 : vector<2x8x1xf32> to vector<2x8x8xf32>
    %50 = arith.mulf %45, %49 : vector<2x8x8xf32>
    "tpu.trace_start"() <{level = 10 : i32, message = "bqk,bkd->bqd"}> : () -> ()
    %cst_19 = arith.constant dense<0.000000e+00> : vector<2x8x8xf32>
    %51 = tpu.matmul %50, %37, %cst_19 {dimension_numbers = #tpu.dot_dimension_numbers<[2], [1], [1], [2], [0, 0, 0, 1, 1, 2], [0], [0]>} : vector<2x8x8xf32>, vector<2x8x8xf32>, vector<2x8x8xf32> -> vector<2x8x8xf32>
    "tpu.trace_stop"() : () -> ()
    %52 = vector.shape_cast %51 : vector<2x8x8xf32> to vector<16x8xf32>
    %53 = vector.extract_strided_slice %3 {offsets = [0, 16], sizes = [16, 8], strides = [1, 1]} : vector<16x32xf32> to vector<16x8xf32>
    %54 = vector.shape_cast %53 : vector<16x8xf32> to vector<2x8x8xf32>
    %55 = vector.extract_strided_slice %6 {offsets = [0, 16], sizes = [16, 8], strides = [1, 1]} : vector<16x32xf32> to vector<16x8xf32>
    %56 = vector.shape_cast %55 : vector<16x8xf32> to vector<2x8x8xf32>
    %57 = vector.extract_strided_slice %9 {offsets = [0, 16], sizes = [16, 8], strides = [1, 1]} : vector<16x32xf32> to vector<16x8xf32>
    %58 = vector.shape_cast %57 : vector<16x8xf32> to vector<2x8x8xf32>
    "tpu.trace_start"() <{level = 10 : i32, message = "bqd,bkd->bqk"}> : () -> ()
    %cst_20 = arith.constant dense<0.000000e+00> : vector<2x8x8xf32>
    %59 = tpu.matmul %54, %56, %cst_20 {dimension_numbers = #tpu.dot_dimension_numbers<[2], [2], [1], [1], [0, 0, 0, 1, 1, 1], [0], [0]>} : vector<2x8x8xf32>, vector<2x8x8xf32>, vector<2x8x8xf32> -> vector<2x8x8xf32>
    "tpu.trace_stop"() : () -> ()
    %60 = vector.broadcast %10 : vector<2x1x8xf32> to vector<2x8x8xf32>
    %61 = arith.addf %59, %60 : vector<2x8x8xf32>
    %cst_21 = arith.constant dense<0xFF800000> : vector<2x8xf32>
    %62 = vector.multi_reduction <maximumf>, %61, %cst_21 [2] : vector<2x8x8xf32> to vector<2x8xf32>
    %63 = vector.shape_cast %62 : vector<2x8xf32> to vector<2x8x1xf32>
    %64 = vector.broadcast %63 : vector<2x8x1xf32> to vector<2x8x8xf32>
    %65 = arith.subf %61, %64 : vector<2x8x8xf32>
    %66 = math.exp %65 : vector<2x8x8xf32>
    %cst_22 = arith.constant dense<0.000000e+00> : vector<2x8xf32>
    %67 = vector.multi_reduction <add>, %66, %cst_22 [2] : vector<2x8x8xf32> to vector<2x8xf32>
    %68 = vector.shape_cast %67 : vector<2x8xf32> to vector<2x8x1xf32>
    %69 = tpu.reciprocal %68 {approx = true} : vector<2x8x1xf32> -> vector<2x8x1xf32>
    %70 = vector.broadcast %69 : vector<2x8x1xf32> to vector<2x8x8xf32>
    %71 = arith.mulf %66, %70 : vector<2x8x8xf32>
    "tpu.trace_start"() <{level = 10 : i32, message = "bqk,bkd->bqd"}> : () -> ()
    %cst_23 = arith.constant dense<0.000000e+00> : vector<2x8x8xf32>
    %72 = tpu.matmul %71, %58, %cst_23 {dimension_numbers = #tpu.dot_dimension_numbers<[2], [1], [1], [2], [0, 0, 0, 1, 1, 2], [0], [0]>} : vector<2x8x8xf32>, vector<2x8x8xf32>, vector<2x8x8xf32> -> vector<2x8x8xf32>
    "tpu.trace_stop"() : () -> ()
    %73 = vector.shape_cast %72 : vector<2x8x8xf32> to vector<16x8xf32>
    %74 = vector.extract_strided_slice %3 {offsets = [0, 24], sizes = [16, 8], strides = [1, 1]} : vector<16x32xf32> to vector<16x8xf32>
    %75 = vector.shape_cast %74 : vector<16x8xf32> to vector<2x8x8xf32>
    %76 = vector.extract_strided_slice %6 {offsets = [0, 24], sizes = [16, 8], strides = [1, 1]} : vector<16x32xf32> to vector<16x8xf32>
    %77 = vector.shape_cast %76 : vector<16x8xf32> to vector<2x8x8xf32>
    %78 = vector.extract_strided_slice %9 {offsets = [0, 24], sizes = [16, 8], strides = [1, 1]} : vector<16x32xf32> to vector<16x8xf32>
    %79 = vector.shape_cast %78 : vector<16x8xf32> to vector<2x8x8xf32>
    "tpu.trace_start"() <{level = 10 : i32, message = "bqd,bkd->bqk"}> : () -> ()
    %cst_24 = arith.constant dense<0.000000e+00> : vector<2x8x8xf32>
    %80 = tpu.matmul %75, %77, %cst_24 {dimension_numbers = #tpu.dot_dimension_numbers<[2], [2], [1], [1], [0, 0, 0, 1, 1, 1], [0], [0]>} : vector<2x8x8xf32>, vector<2x8x8xf32>, vector<2x8x8xf32> -> vector<2x8x8xf32>
    "tpu.trace_stop"() : () -> ()
    %81 = vector.broadcast %10 : vector<2x1x8xf32> to vector<2x8x8xf32>
    %82 = arith.addf %80, %81 : vector<2x8x8xf32>
    %cst_25 = arith.constant dense<0xFF800000> : vector<2x8xf32>
    %83 = vector.multi_reduction <maximumf>, %82, %cst_25 [2] : vector<2x8x8xf32> to vector<2x8xf32>
    %84 = vector.shape_cast %83 : vector<2x8xf32> to vector<2x8x1xf32>
    %85 = vector.broadcast %84 : vector<2x8x1xf32> to vector<2x8x8xf32>
    %86 = arith.subf %82, %85 : vector<2x8x8xf32>
    %87 = math.exp %86 : vector<2x8x8xf32>
    %cst_26 = arith.constant dense<0.000000e+00> : vector<2x8xf32>
    %88 = vector.multi_reduction <add>, %87, %cst_26 [2] : vector<2x8x8xf32> to vector<2x8xf32>
    %89 = vector.shape_cast %88 : vector<2x8xf32> to vector<2x8x1xf32>
    %90 = tpu.reciprocal %89 {approx = true} : vector<2x8x1xf32> -> vector<2x8x1xf32>
    %91 = vector.broadcast %90 : vector<2x8x1xf32> to vector<2x8x8xf32>
    %92 = arith.mulf %87, %91 : vector<2x8x8xf32>
    "tpu.trace_start"() <{level = 10 : i32, message = "bqk,bkd->bqd"}> : () -> ()
    %cst_27 = arith.constant dense<0.000000e+00> : vector<2x8x8xf32>
    %93 = tpu.matmul %92, %79, %cst_27 {dimension_numbers = #tpu.dot_dimension_numbers<[2], [1], [1], [2], [0, 0, 0, 1, 1, 2], [0], [0]>} : vector<2x8x8xf32>, vector<2x8x8xf32>, vector<2x8x8xf32> -> vector<2x8x8xf32>
    "tpu.trace_stop"() : () -> ()
    %94 = vector.shape_cast %93 : vector<2x8x8xf32> to vector<16x8xf32>
    %95 = tpu.concatenate %31, %52, %73, %94 in 1 : vector<16x8xf32>, vector<16x8xf32>, vector<16x8xf32>, vector<16x8xf32> -> vector<16x32xf32>
    %c0_28 = arith.constant 0 : index
    %c0_29 = arith.constant 0 : index
    %96 = vector.load %arg6[%c0_28, %c0_29] : memref<32x32xf32, #tpu.memory_space<vmem>>, vector<32x32xf32>
    %cst_30 = arith.constant dense<0.000000e+00> : vector<16x32xf32>
    %97 = tpu.matmul %95, %96, %cst_30 {dimension_numbers = #tpu.dot_dimension_numbers<[1], [0], [0], [1], [0, 0, 1, 1], [], []>} : vector<16x32xf32>, vector<32x32xf32>, vector<16x32xf32> -> vector<16x32xf32>
    %c0_31 = arith.constant 0 : index
    %c0_32 = arith.constant 0 : index
    %98 = vector.load %arg4[%c0_31, %c0_32] : memref<16x1xf32, #tpu.memory_space<vmem>>, vector<16x1xf32>
    %cst_33 = arith.constant 5.000000e-01 : f32
    %99 = vector.broadcast %cst_33 : f32 to vector<16x1xf32>
    %100 = arith.cmpf ogt, %98, %99 : vector<16x1xf32>
    %cst_34 = arith.constant 0.000000e+00 : f32
    %101 = vector.shape_cast %100 : vector<16x1xi1> to vector<16x1xi1>
    %102 = vector.broadcast %101 : vector<16x1xi1> to vector<16x32xi1>
    %103 = vector.broadcast %cst_34 : f32 to vector<16x32xf32>
    %104 = arith.select %102, %103, %97 : vector<16x32xi1>, vector<16x32xf32>
    %c0_35 = arith.constant 0 : index
    %c0_36 = arith.constant 0 : index
    %105 = vector.load %arg7[%c0_35, %c0_36] : memref<16x32xf32, #tpu.memory_space<vmem>>, vector<16x32xf32>
    tpu.vector_store %arg7[%c0_35, %c0_36], %104 {strides = array<i32>} : memref<16x32xf32, #tpu.memory_space<vmem>>, vector<16x32xf32>,
    return
  }
}

</mosaic_0001>

<bundles_post_ra>
// kernel: multi_head_attention.1
= control target key start
LH: loop header
LB: loop body
LE: loop exit
PB: predicated region body
PF: predicated region fallthrough
CT: control target
= control target key end

     0   :  { %s867_s28 = smov 96   ;;  %vm32_vm0 = vcmask 261120   ;;  %s868_s14 = smov 64   ;;  %vm160_vm1 = vcmask 64512   ;;  %vm699_vm4 = vcmask 130048   ;;  %vm702_vm5 = vcmask 195584   ;;  %s1061_s5 = inlined_call_operand.vmem [shape: f32[32,96], index: 5, kind: input, shape index: {}]   ;;  %s1062_s0 = inlined_call_operand.vmem [shape: f32[16,32], index: 0, kind: input, shape index: {}]   ;;  %s1063_s1 = inlined_call_operand.vmem [shape: f32[16,32], index: 1, kind: input, shape index: {}]   ;;  %s1064_s3 = inlined_call_operand.vmem [shape: f32[2,1,8], index: 3, kind: input, shape index: {}]   ;;  %s1065_s2 = inlined_call_operand.vmem [shape: f32[16,32], index: 2, kind: input, shape index: {}]   ;;  %s1066_s6 = inlined_call_operand.vmem [shape: f32[32,32], index: 6, kind: input, shape index: {}]   ;;  %s1067_s4 = inlined_call_operand.vmem [shape: f32[16,1], index: 4, kind: input, shape index: {}]   ;;  %s1068_s7 = inlined_call_operand.vmem [shape: f32[16,32], index: 7, kind: output, shape index: {}]  }
   0x1   :  { %v28_v0 = vld [vmem:[%s1061_s5 + $0x10] sm:$0xff]  ;;  %v29_v1 = vld [vmem:[%s1061_s5 + $0x18] sm:$0xff]  ;;  %v26_v3 = vld [vmem:[%s1061_s5] sm:$0xff]  ;;  %s869_s17 = smov 120   ;;  %s870_s18 = smov 112  }
   0x2   :  { %v805_v2 = vpack.i.bf16 %v28_v0, %v29_v1  ;;  %51 = vmatpush.msra.mxu0 %v29_v1  ;;  %v27_v4 = vld [vmem:[%s1061_s5 + $0x8] sm:$0xff]  ;;  %v30_v6 = vld [vmem:[%s1062_s0] sm:$0xff]  ;;  %s873_s26 = smov 16   ;;  %s874_s27 = smov 24  }
   0x3   :  { %v810_v5 = vpack.i.bf16 %v26_v3, %v27_v4  ;;  %v31_v7 = vld [vmem:[%s1062_s0 + $0x8] sm:$0xff]  ;;  %v62_v14 = vld [vmem:[%s1063_s1] sm:$0xff] }
   0x4   :  { %806 = vrot.lane.b32.xlu0 %v805_v2, %s867_s28  ;;  %52 = vmatpush.msra.mxu0 %v28_v0  ;;  %v63_v15 = vld [vmem:[%s1063_s1 + $0x8] sm:$0xff]  ;;  %s871_s1 = smov 104   ;;  %v109_v26 = vld [vmem:[%s1065_s2] sm:$0xff] }
   0x5   :  { %816 = vrot.lane.b32.xlu1 %v805_v2, %s868_s14  ;;  %v110_v27 = vld [vmem:[%s1065_s2 + $0x8] sm:$0xff]  ;;  %v833_v37 = vld [vmem:[%s1064_s3] ss:$0 sm:$0xff]  ;;  %v834_v43 = vld [vmem:[%s1064_s3 + $0x1] ss:$0 sm:$0xff]  ;;  %s872_s3 = smov 8  }
   0x6   :  { %53 = vmatpush.msra.mxu0 %v27_v4 }
   0x8   :  { %54 = vmatpush.msra.mxu0 %v26_v3 }
   0x9   :  { %760 = vmatmul.msk.f32.vlgmr.msra.gmra.mxu0 %vm32_vm0, %v30_v6 }
   0xc   :  { %811 = vrot.lane.b32.xlu0 %v810_v5, %s867_s28 }
   0xd   :  { %821 = vrot.lane.b32.xlu1 %v810_v5, %s868_s14 }
  0x11   :  { %761 = vmatmul.msk.f32.gmra.mxu0 %vm32_vm0, %v31_v7 }
  0x76   :  { %v807_v8 = vpop.permute.xlu0 %806 }
  0x77   :  { %v808_v9 = vunpack.i.l.bf16 %v807_v8  ;;  %v809_v10 = vunpack.i.h.bf16 %v807_v8  ;;  %v817_v20 = vpop.permute.xlu1 %816 }
  0x78   :  { %v818_v21 = vunpack.i.l.bf16 %v817_v20  ;;  %v819_v22 = vunpack.i.h.bf16 %v817_v20 }
  0x79   :  { %98 = vmatpush.msra.mxu1 %v808_v9  ;;  %792 = vmatpush.msra.mxu2 %v808_v9 }
  0x7b   :  { %99 = vmatpush.msra.mxu1 %v809_v10  ;;  %793 = vmatpush.msra.mxu2 %v809_v10 }
  0x7e   :  { %v812_v11 = vpop.permute.xlu0 %811 }
  0x7f   :  { %v813_v12 = vunpack.i.l.bf16 %v812_v11  ;;  %v814_v13 = vunpack.i.h.bf16 %v812_v11  ;;  %v822_v23 = vpop.permute.xlu1 %821 }
  0x80   :  { %v823_v24 = vunpack.i.l.bf16 %v822_v23  ;;  %v824_v25 = vunpack.i.h.bf16 %v822_v23 }
  0x81   :  { %100 = vmatpush.msra.mxu1 %v813_v12  ;;  %794 = vmatpush.msra.mxu2 %v813_v12 }
  0x83   :  { %101 = vmatpush.msra.mxu1 %v814_v13  ;;  %795 = vmatpush.msra.mxu2 %v814_v13 }
  0x84   :  { %762 = vmatmul.msk.f32.vlgmr.msra.gmra.mxu1 %vm32_vm0, %v62_v14  ;;  %763 = vmatmul.msk.f32.vlgmr.msra.gmra.mxu2 %vm32_vm0, %v63_v15 }
  0x85   :  { %141 = vmatpush.msrb.mxu2 %v818_v21 }
  0x86   :  { %v56_v16 = vpop.f32.mrf.mxu0 }
  0x87   :  { %281 = vrot.lane.b32.xlu2 %v56_v16, %s869_s17  ;;  %142 = vmatpush.msrb.mxu2 %v819_v22 }
  0x89   :  { %143 = vmatpush.msrb.mxu2 %v823_v24 }
  0x8b   :  { %144 = vmatpush.msrb.mxu2 %v824_v25 }
  0x8c   :  { %764 = vmatmul.msk.f32.vlgmr.msrb.gmra.mxu2 %vm32_vm0, %v109_v26 }
  0x8e   :  { %v59_v19 = vpop.f32.mrf.mxu0 }
  0x94   :  { %765 = vmatmul.msk.f32.gmra.mxu2 %vm32_vm0, %v110_v27 }
  0xe1   :  { %v282_v28 = vpop.permute.xlu2 %281 }
 0x101   :  { %v103_v17 = vpop.f32.mrf.mxu1 }
 0x102   :  { %415 = vrot.lane.b32.xlu1 %v103_v17, %s870_s18  ;;  %766 = vmatpush.xpose.msk.msra.mxu3 %vm160_vm1, %v103_v17 }
 0x103   :  { %283 = vrot.lane.b32.xlu2 %v103_v17, %s869_s17 }
 0x105   :  { %767 = vmatmul.msk.f32.vlgmr.msra.gmra.mxu3 %vm160_vm1, %v56_v16 }
 0x107   :  { %v106_v18 = vpop.f32.mrf.mxu2 }
 0x108   :  { %311 = vrot.lane.b32.xlu0 %v106_v18, %s869_s17  ;;  %768 = vmatpush.xpose.msk.msrb.mxu3 %vm160_vm1, %v106_v18 }
 0x10a   :  { %443 = vrot.lane.b32.xlu1 %v106_v18, %s870_s18 }
 0x10b   :  { %309 = vrot.lane.b32.xlu2 %v59_v19, %s869_s17 }
 0x10d   :  { %769 = vmatmul.msk.f32.vlgmr.msrb.gmra.mxu3 %vm160_vm1, %v59_v19 }
 0x10f   :  { %v988_v48 = vpop.f32.mrf.mxu2 }
 0x110   :  { %413 = vrot.lane.b32.xlu0 %v56_v16, %s870_s18  ;;  %253 = vmatpush.msra.mxu3 %v988_v48 }
 0x112   :  { %543 = vrot.lane.b32.xlu1 %v56_v16, %s871_s1 }
 0x113   :  { %545 = vrot.lane.b32.xlu2 %v103_v17, %s871_s1 }
 0x117   :  { %v991_v49 = vpop.f32.mrf.mxu2 }
 0x118   :  { %441 = vrot.lane.b32.xlu0 %v59_v19, %s870_s18  ;;  %276 = vmatpush.msrb.mxu0 %v991_v49  ;;  %v825_v14 = vpack.i.bf16 %v991_v49, %v988_v48 }
 0x11b   :  { %573 = vrot.lane.b32.xlu2 %v106_v18, %s871_s1 }
 0x120   :  { %571 = vrot.lane.b32.xlu0 %v59_v19, %s871_s1 }
 0x15d   :  { %v284_v29 = vpop.permute.xlu2 %283 }
 0x15e   :  { %772 = vmatpush.xpose.msk.msrb.mxu1 %vm160_vm1, %v284_v29 }
 0x161   :  { %773 = vmatmul.msk.f32.vlgmr.msrb.gmra.mxu1 %vm160_vm1, %v282_v28 }
 0x165   :  { %v310_v30 = vpop.permute.xlu2 %309 }
 0x16d   :  { %v546_v31 = vpop.permute.xlu2 %545 }
 0x174   :  { %v416_v32 = vpop.permute.xlu1 %415 }
 0x175   :  { %778 = vmatpush.xpose.msk.msra.mxu1 %vm160_vm1, %v416_v32  ;;  %v574_v35 = vpop.permute.xlu2 %573 }
 0x179   :  { %784 = vmatpush.xpose.msk.msrb.mxu1 %vm160_vm1, %v546_v31 }
 0x17a   :  { %v312_v33 = vpop.permute.xlu0 %311 }
 0x17b   :  { %774 = vmatpush.xpose.msk.msra.mxu2 %vm160_vm1, %v312_v33 }
 0x17c   :  { %v444_v34 = vpop.permute.xlu1 %443 }
 0x17e   :  { %775 = vmatmul.msk.f32.vlgmr.msra.gmra.mxu2 %vm160_vm1, %v310_v30 }
 0x17f   :  { %780 = vmatpush.xpose.msk.msrb.mxu2 %vm160_vm1, %v444_v34 }
 0x182   :  { %v414_v36 = vpop.permute.xlu0 %413 }
 0x183   :  { %786 = vmatpush.xpose.msk.msra.mxu2 %vm160_vm1, %v574_v35  ;;  %779 = vmatmul.msk.f32.vlgmr.msra.gmra.mxu1 %vm160_vm1, %v414_v36 }
 0x184   :  { %v544_v40 = vpop.permute.xlu1 %543 }
 0x188   :  { %v184_v38 = vpop.f32.mrf.mxu3 }
 0x189   :  { %v185_v39 = vadd.f32 %v833_v37, %v184_v38 }
 0x18a   :  { %v442_v41 = vpop.permute.xlu0 %441 }
 0x18b   :  { %781 = vmatmul.msk.f32.vlgmr.msrb.gmra.mxu2 %vm160_vm1, %v442_v41  ;;  %785 = vmatmul.msk.f32.vlgmr.msrb.gmra.mxu1 %vm160_vm1, %v544_v40  ;;  %v213_v42 = vsel %vm160_vm1, %v185_v39, -inf }
 0x18c   :  { %214 = vmax.xlane.f32.xlu1 %v213_v42 }
 0x190   :  { %v210_v44 = vpop.f32.mrf.mxu3 }
 0x191   :  { %v211_v45 = vadd.f32 %v834_v43, %v210_v44 }
 0x192   :  { %v572_v46 = vpop.permute.xlu0 %571 }
 0x193   :  { %v216_v47 = vsel %vm160_vm1, %v211_v45, -inf  ;;  %787 = vmatmul.msk.f32.vlgmr.msra.gmra.mxu2 %vm160_vm1, %v572_v46 }
 0x194   :  { %217 = vmax.xlane.f32.xlu0 %v216_v47 }
 0x1de   :  { %v306_v50 = vpop.f32.mrf.mxu1 }
 0x1df   :  { %v307_v51 = vadd.f32 %v833_v37, %v306_v50 }
 0x1e1   :  { %v337_v52 = vsel %vm160_vm1, %v307_v51, -inf }
 0x1e2   :  { %338 = vmax.xlane.f32.xlu2 %v337_v52 }
 0x1ff   :  { %v215_v53 = vpop.xlane.xlu1 %214 }
 0x200   :  { %v438_v54 = vpop.f32.mrf.mxu1  ;;  %v219_v57 = vsub.f32 %v185_v39, %v215_v53 }
 0x201   :  { %v439_v55 = vadd.f32 %v833_v37, %v438_v54  ;;  %v334_v56 = vpop.f32.mrf.mxu2 }
 0x202   :  { %v335_v58 = vadd.f32 %v834_v43, %v334_v56  ;;  %v221_v61 = vmul.f32 1.442695, %v219_v57 }
 0x203   :  { %v469_v59 = vsel %vm160_vm1, %v439_v55, -inf }
 0x204   :  { %470 = vmax.xlane.f32.xlu2 %v469_v59  ;;  %v340_v60 = vsel %vm160_vm1, %v335_v58, -inf  ;;  %835 = vpow2.f32 %v221_v61 }
 0x205   :  { %341 = vmax.xlane.f32.xlu1 %v340_v60 }
 0x207   :  { %v218_v62 = vpop.xlane.xlu0 %217 }
 0x208   :  { %v220_v63 = vsub.f32 %v211_v45, %v218_v62  ;;  %v568_v0 = vpop.f32.mrf.mxu1 }
 0x209   :  { %v569_v1 = vadd.f32 %v833_v37, %v568_v0 }
 0x20a   :  { %v223_v2 = vmul.f32 1.442695, %v220_v63  ;;  %v836_v6 = vpop.eup %835 }
 0x20b   :  { %v599_v3 = vsel %vm160_vm1, %v569_v1, -inf  ;;  %v225_v9 = vsel %vm160_vm1, %v836_v6, 0.0 }
 0x20c   :  { %837 = vpow2.f32 %v223_v2  ;;  %600 = vmax.xlane.f32.xlu2 %v599_v3 }
 0x20e   :  { %v466_v4 = vpop.f32.mrf.mxu2 }
 0x20f   :  { %v467_v5 = vadd.f32 %v834_v43, %v466_v4 }
 0x211   :  { %v472_v7 = vsel %vm160_vm1, %v467_v5, -inf }
 0x212   :  { %v838_v8 = vpop.eup %837  ;;  %473 = vmax.xlane.f32.xlu0 %v472_v7 }
 0x213   :  { %v228_v10 = vsel %vm160_vm1, %v838_v8, 0.0 }
 0x214   :  { %226 = vadd.xlane.f32.xlu2 %v225_v9  ;;  %229 = vadd.xlane.f32.xlu1 %v228_v10 }
 0x216   :  { %v596_v11 = vpop.f32.mrf.mxu2 }
 0x217   :  { %v597_v12 = vadd.f32 %v834_v43, %v596_v11 }
 0x219   :  { %v602_v13 = vsel %vm160_vm1, %v597_v12, -inf }
 0x21c   :  { %603 = vmax.xlane.f32.xlu1 %v602_v13 }
 0x226   :  { %826 = vrot.lane.b32.xlu0 %v825_v14, %s869_s17 }
 0x255   :  { %v339_v15 = vpop.xlane.xlu2 %338 }
 0x256   :  { %v343_v16 = vsub.f32 %v307_v51, %v339_v15 }
 0x258   :  { %v345_v17 = vmul.f32 1.442695, %v343_v16 }
 0x25a   :  { %839 = vpow2.f32 %v345_v17 }
 0x260   :  { %v840_v18 = vpop.eup %839 }
 0x261   :  { %v349_v19 = vsel %vm160_vm1, %v840_v18, 0.0 }
 0x262   :  { %350 = vadd.xlane.f32.xlu0 %v349_v19 }
 0x276   :  { %621 = vrot.lane.b32.xlu0 %v988_v48, %s871_s1 }
 0x277   :  { %v471_v20 = vpop.xlane.xlu2 %470 }
 0x278   :  { %v475_v21 = vsub.f32 %v439_v55, %v471_v20  ;;  %v342_v22 = vpop.xlane.xlu1 %341  ;;  %v708_v20 = vld [vmem:[%s1066_s6 + $0x18] sm:$0xff] }
 0x279   :  { %v344_v23 = vsub.f32 %v335_v58, %v342_v22  ;;  %727 = vmatpush.msra.mxu1 %v708_v20  ;;  %v706_v22 = vld [vmem:[%s1066_s6 + $0x8] sm:$0xff] }
 0x27a   :  { %v477_v24 = vmul.f32 1.442695, %v475_v21  ;;  %v707_v21 = vld [vmem:[%s1066_s6 + $0x10] sm:$0xff] }
 0x27b   :  { %v347_v25 = vmul.f32 1.442695, %v344_v23  ;;  %728 = vmatpush.msra.mxu1 %v707_v21  ;;  %v705_v23 = vld [vmem:[%s1066_s6] sm:$0xff] }
 0x27c   :  { %841 = vpow2.f32 %v477_v24  ;;  %v739_v24 = vld [vmem:[%s1067_s4 + $0x8] sm:$0xff] }
 0x27d   :  { %843 = vpow2.f32 %v347_v25  ;;  %729 = vmatpush.msra.mxu1 %v706_v22  ;;  %v738_v25 = vld [vmem:[%s1067_s4] sm:$0xff]  ;;  %vm741_vm2 = vcmp.gt.f32.partialorder %v739_v24, 0.5 }
 0x27e   :  { %517 = vrot.lane.b32.xlu0 %v991_v49, %s870_s18  ;;  %vm740_vm3 = vcmp.gt.f32.partialorder %v738_v25, 0.5 }
 0x27f   :  { %v601_v26 = vpop.xlane.xlu2 %600  ;;  %730 = vmatpush.msra.mxu1 %v705_v23 }
 0x280   :  { %v605_v27 = vsub.f32 %v569_v1, %v601_v26  ;;  %v875_v26 = vmov 0  }
 0x281   :  { %831 = vset.pattern.permute.xlu1 %v875_v26  ;;  %830 = vset.pattern.permute.xlu2 %v875_v26 }
 0x282   :  { %v1010_v28 = vpop.eup %841  ;;  %v607_v29 = vmul.f32 1.442695, %v605_v27  ;;  %v743_v27 = vsel %vm741_vm2, 1, %v875_v26  ;;  %832 = vset.pattern.permute.xlu0 %v875_v26 }
 0x283   :  { %v844_v30 = vpop.eup %843  ;;  %v481_v31 = vsel %vm160_vm1, %v1010_v28, 0.0 }
 0x284   :  { %845 = vpow2.f32 %v607_v29  ;;  %482 = vadd.xlane.f32.xlu2 %v481_v31  ;;  %v352_v32 = vsel %vm160_vm1, %v844_v30, 0.0 }
 0x285   :  { %353 = vadd.xlane.f32.xlu1 %v352_v32  ;;  %v474_v33 = vpop.xlane.xlu0 %473 }
 0x286   :  { %v476_v34 = vsub.f32 %v467_v5, %v474_v33 }
 0x287   :  { %v227_v35 = vpop.xlane.xlu2 %226  ;;  %v230_v36 = vpop.xlane.xlu1 %229 }
 0x288   :  { %v479_v37 = vmul.f32 1.442695, %v476_v34  ;;  %847 = vrcp.f32 %v227_v35 }
 0x289   :  { %849 = vrcp.f32 %v230_v36 }
 0x28a   :  { %v846_v38 = vpop.eup %845  ;;  %851 = vpow2.f32 %v479_v37 }
 0x28b   :  { %v611_v39 = vsel %vm160_vm1, %v846_v38, 0.0 }
 0x28c   :  { %612 = vadd.xlane.f32.xlu2 %v611_v39 }
 0x28e   :  { %v848_v40 = vpop.eup %847 }
 0x28f   :  { %v850_v41 = vpop.eup %849  ;;  %v233_v42 = vmul.f32 %v848_v40, %v836_v6  ;;  %v604_v43 = vpop.xlane.xlu1 %603 }
 0x290   :  { %v852_v44 = vpop.eup %851  ;;  %v606_v45 = vsub.f32 %v597_v12, %v604_v43  ;;  %v234_v46 = vmul.f32 %v850_v41, %v838_v8 }
 0x291   :  { %770 = vmatmul.msk.f32.vlgmr.msra.gmra.mxu3 %vm160_vm1, %v233_v42  ;;  %v484_v50 = vsel %vm160_vm1, %v852_v44, 0.0 }
 0x292   :  { %v609_v47 = vmul.f32 1.442695, %v606_v45  ;;  %771 = vmatmul.msk.f32.vlgmr.msrb.gmra.mxu0 %vm160_vm1, %v234_v46 }
 0x294   :  { %853 = vpow2.f32 %v609_v47  ;;  %485 = vadd.xlane.f32.xlu2 %v484_v50 }
 0x298   :  { %v827_v51 = vpop.permute.xlu0 %826 }
 0x299   :  { %v829_v52 = vunpack.i.h.bf16 %v827_v51  ;;  %v828_v53 = vunpack.i.l.bf16 %v827_v51 }
 0x29a   :  { %v854_v54 = vpop.eup %853 }
 0x29b   :  { %381 = vmatpush.msrb.mxu3 %v828_v53  ;;  %408 = vmatpush.msra.mxu0 %v829_v52  ;;  %v614_v55 = vsel %vm160_vm1, %v854_v54, 0.0 }
 0x29c   :  { %615 = vadd.xlane.f32.xlu2 %v614_v55 }
 0x29e   :  { %491 = vrot.lane.b32.xlu1 %v988_v48, %s870_s18 }
 0x2b4   :  { %647 = vrot.lane.b32.xlu2 %v991_v49, %s871_s1 }
 0x2d5   :  { %v351_v56 = vpop.xlane.xlu0 %350 }
 0x2d6   :  { %855 = vrcp.f32 %v351_v56 }
 0x2dc   :  { %v856_v57 = vpop.eup %855 }
 0x2dd   :  { %v357_v58 = vmul.f32 %v856_v57, %v840_v18 }
 0x2df   :  { %776 = vmatmul.msk.f32.vlgmr.msrb.gmra.mxu3 %vm160_vm1, %v357_v58 }
 0x2e8   :  { %v622_v59 = vpop.permute.xlu0 %621 }
 0x2f0   :  { %v518_v60 = vpop.permute.xlu0 %517 }
 0x2f1   :  { %538 = vmatpush.msrb.mxu0 %v518_v60 }
 0x2f7   :  { %v483_v61 = vpop.xlane.xlu2 %482 }
 0x2f8   :  { %v354_v62 = vpop.xlane.xlu1 %353 }
 0x2f9   :  { %857 = vrcp.f32 %v354_v62 }
 0x2fa   :  { %859 = vrcp.f32 %v483_v61 }
 0x2ff   :  { %v858_v63 = vpop.eup %857  ;;  %v613_v0 = vpop.xlane.xlu2 %612 }
 0x300   :  { %v358_v1 = vmul.f32 %v858_v63, %v844_v30  ;;  %v860_v49 = vpop.eup %859 }
 0x301   :  { %v489_v5 = vmul.f32 %v860_v49, %v1010_v28  ;;  %v742_v28 = vsel %vm740_vm3, 1, %v875_v26 }
 0x302   :  { %777 = vmatmul.msk.f32.vlgmr.msra.gmra.mxu0 %vm160_vm1, %v358_v1  ;;  %745 = vperm.xlu2 %830, %v742_v28  }
 0x307   :  { %v486_v48 = vpop.xlane.xlu2 %485 }
 0x308   :  { %861 = vrcp.f32 %v486_v48 }
 0x309   :  { %863 = vrcp.f32 %v613_v0 }
 0x30e   :  { %v862_v2 = vpop.eup %861 }
 0x30f   :  { %v490_v3 = vmul.f32 %v862_v2, %v852_v44  ;;  %v616_v4 = vpop.xlane.xlu2 %615  ;;  %v864_v7 = vpop.eup %863 }
 0x310   :  { %865 = vrcp.f32 %v616_v4  ;;  %v492_v6 = vpop.permute.xlu1 %491  ;;  %v619_v11 = vmul.f32 %v864_v7, %v846_v38  ;;  %v278_v14 = vpop.f32.mrf.mxu0 }
 0x311   :  { %512 = vmatpush.msra.mxu3 %v492_v6  ;;  %783 = vmatmul.msk.f32.vlgmr.msrb.gmra.mxu0 %vm160_vm1, %v490_v3 }
 0x312   :  { %782 = vmatmul.msk.f32.vlgmr.msra.gmra.mxu3 %vm160_vm1, %v489_v5 }
 0x313   :  { %642 = vmatpush.msrb.mxu3 %v622_v59 }
 0x314   :  { %v255_v12 = vpop.f32.mrf.mxu3 }
 0x316   :  { %v866_v8 = vpop.eup %865 }
 0x317   :  { %v620_v9 = vmul.f32 %v866_v8, %v854_v54  ;;  %v648_v10 = vpop.permute.xlu2 %647 }
 0x318   :  { %668 = vmatpush.msra.mxu0 %v648_v10 }
 0x319   :  { %789 = vmatmul.msk.f32.vlgmr.msra.gmra.mxu0 %vm160_vm1, %v620_v9 }
 0x31a   :  { %788 = vmatmul.msk.f32.vlgmr.msrb.gmra.mxu3 %vm160_vm1, %v619_v11 }
 0x35c   :  { %v746_v41 = vpop.permute.xlu2 %745 }
 0x35d   :  { %vm750_vm6 = vcmp.eq.s32.totalorder %v746_v41, 1 }
 0x362   :  { %v383_v13 = vpop.f32.mrf.mxu3 }
 0x363   :  { %675 = vrot.lane.b32.xlu1 %v383_v13, %s872_s3 }
 0x37f   :  { %v410_v15 = vpop.f32.mrf.mxu0 }
 0x38e   :  { %v540_v17 = vpop.f32.mrf.mxu0 }
 0x395   :  { %v514_v16 = vpop.f32.mrf.mxu3 }
 0x396   :  { %683 = vrot.lane.b32.xlu0 %v514_v16, %s873_s26  ;;  %v670_v19 = vpop.f32.mrf.mxu0 }
 0x39d   :  { %v644_v18 = vpop.f32.mrf.mxu3 }
 0x39e   :  { %677 = vrot.lane.b32.xlu0 %v410_v15, %s872_s3  ;;  %691 = vrot.lane.b32.xlu1 %v644_v18, %s874_s27 }
 0x3a6   :  { %693 = vrot.lane.b32.xlu0 %v670_v19, %s874_s27  ;;  %685 = vrot.lane.b32.xlu1 %v540_v17, %s873_s26 }
 0x3ae   :  { %748 = vperm.xlu1 %831, %v743_v27  }
 0x3d5   :  { %v676_v29 = vpop.permute.xlu1 %675 }
 0x3d6   :  { %v697_v31 = vsel %vm160_vm1, %v255_v12, %v676_v29 }
 0x408   :  { %v684_v30 = vpop.permute.xlu0 %683 }
 0x409   :  { %v700_v32 = vsel %vm699_vm4, %v697_v31, %v684_v30 }
 0x410   :  { %v678_v33 = vpop.permute.xlu0 %677  ;;  %v692_v34 = vpop.permute.xlu1 %691 }
 0x411   :  { %v703_v35 = vsel %vm702_vm5, %v700_v32, %v692_v34  ;;  %v698_v36 = vsel %vm160_vm1, %v278_v14, %v678_v33 }
 0x412   :  { %790 = vmatmul.msk.f32.vlgmr.msra.gmra.mxu1 %vm32_vm0, %v703_v35 }
 0x418   :  { %v694_v37 = vpop.permute.xlu0 %693  ;;  %v686_v38 = vpop.permute.xlu1 %685 }
 0x419   :  { %v701_v39 = vsel %vm699_vm4, %v698_v36, %v686_v38 }
 0x41a   :  { %v704_v40 = vsel %vm702_vm5, %v701_v39, %v694_v37 }
 0x41b   :  { %791 = vmatmul.msk.f32.gmra.mxu1 %vm32_vm0, %v704_v40 }
 0x420   :  { %v749_v44 = vpop.permute.xlu1 %748 }
 0x421   :  { %vm751_vm7 = vcmp.eq.s32.totalorder %v749_v44, 1 }
 0x48f   :  { %v732_v42 = vpop.f32.mrf.mxu1 }
 0x490   :  { %v752_v43 = vsel %vm750_vm6, 0.0, %v732_v42 }
 0x491   :  { %754 = vst.msk [vmem:[%s1068_s7] sm:$0xff] %vm32_vm0, %v752_v43 }
 0x498   :  { %v735_v45 = vpop.f32.mrf.mxu1 }
 0x499   :  { %v753_v46 = vsel %vm751_vm7, 0.0, %v735_v45 }
 0x49a   :  { %755 = vst.msk [vmem:[%s1068_s7 + $0x8] sm:$0xff] %vm32_vm0, %v753_v46 }

</bundles_post_ra>
